<compile_context>
chip_gen: v7x
topology: tpu7x:2x2x1
jax: 0.10.0
libtpu: 0.0.40
codegen_flags: <defaults>
</compile_context>

<pallas_src>
import numpy as np
import jax
import jax.numpy as jnp
from jax import lax
from jax.experimental import pallas as pl
from jax.experimental.pallas import tpu as pltpu


def _make_kernel(q: float, tn: int, width: int, nodes_per_row: int, feat_per_node: int):
    # 24-bit threshold: P(u24 < thresh) == q (exact at q=0 and q=1).
    # Python int -> jaxpr literal (no captured device constant).
    thresh = int(round(q * (1 << 24)))

    # When several nodes share one 128-wide lane row, feat_per_node is a power
    # of two (divisor of 128), so lane -> node-within-row is a shift.
    lane_shift = feat_per_node.bit_length() - 1

    def _hash(node_u32, seed_u32):
        # lowbias32-style integer finisher (pure VPU work).
        h = node_u32 ^ (seed_u32 * np.uint32(0x9E3779B9))
        h = h ^ (h >> 16)
        h = h * np.uint32(0x7FEB352D)
        h = h ^ (h >> 15)
        h = h * np.uint32(0x846CA68B)
        h = h ^ (h >> 16)
        return h

    def kernel(seed_ref, x_ref, o_ref):
        seed_u = seed_ref[0].astype(jnp.uint32)
        row0 = pl.program_id(0) * tn

        if nodes_per_row == 1:
            # Hoisted: one hash per node (row), (tn, 1) tile, broadcast over features.
            node = lax.broadcasted_iota(jnp.int32, (tn, 1), 0) + row0
        else:
            # Lane-dense path: several nodes packed per 128-lane row.
            row = lax.broadcasted_iota(jnp.int32, (tn, width), 0) + row0
            lane = lax.broadcasted_iota(jnp.int32, (tn, width), 1)
            node = row * nodes_per_row + (lane >> lane_shift)

        h = _hash(node.astype(jnp.uint32), seed_u)
        drop = (h >> 8) < thresh               # P(drop) == q
        o_ref[...] = jnp.where(drop, 0, x_ref[...]).astype(o_ref.dtype)

    return kernel


def _pick_row_tile(rows: int, width: int, itemsize: int) -> int:
    """Row tile sized by bytes (~6 MiB/block), aligned to dtype sublane packing."""
    per_row = max(1, width * itemsize)
    align = max(8, 32 // itemsize)          # 8 (f32) / 16 (bf16) / 32 (i8) sublane packing
    target_block = 6 * 1024 * 1024          # ~6 MiB -> ~24 MiB with in+out double buffers
    tn = max(align, (target_block // per_row) // align * align)
    if tn < rows:
        return tn
    # Whole array fits one block: still split so a second TensorCore (v7x) gets work.
    if rows >= 8 * align:
        nblk = 8
    elif rows >= 2 * align:
        nblk = 2
    else:
        return rows                          # tiny input: single full-extent block
    tn = -(-rows // nblk)                    # ceil(rows / nblk)
    tn = ((tn + align - 1) // align) * align
    return min(tn, rows)


def mask_node(x: jax.Array, q: float = 0.7, seed: int = 0) -> jax.Array:
    """Pallas equivalent of MaskNode.forward / mask_node_features."""
    if q < 0.0 or q > 1.0:
        raise ValueError(f"Mask probability has to be between 0 and 1 (got {q})")
    N, D = x.shape
    if N == 0 or D == 0:
        return x

    itemsize = jnp.dtype(x.dtype).itemsize

    # Lane-dense layout: pack 128 // D nodes per 128-wide row when D is a small
    # power-of-two divisor of 128 (keeps stores full-width, no vst.msk).
    if D < 128 and 128 % D == 0 and (N * D) % 128 == 0:
        nodes_per_row = 128 // D
        width = 128
        rows = (N * D) // 128
        xr = x.reshape(rows, width)
    else:
        nodes_per_row = 1
        width = D
        rows = N
        xr = x

    tn = _pick_row_tile(rows, width, itemsize)
    grid = (pl.cdiv(rows, tn),)              # ragged last block handled by Pallas

    block_bytes = tn * width * itemsize
    # Actual usage (in + out, double-buffered) plus headroom; never the full v7x VMEM.
    vmem_limit = int(min(max(4 * block_bytes + (4 << 20), 16 << 20), 48 << 20))

    seed_arr = jnp.asarray([seed], dtype=jnp.int32)
    kernel = _make_kernel(q, tn, width, nodes_per_row, D)

    out = pl.pallas_call(
        kernel,
        out_shape=jax.ShapeDtypeStruct((rows, width), x.dtype),
        grid_spec=pltpu.PrefetchScalarGridSpec(
            num_scalar_prefetch=1,
            grid=grid,
            in_specs=[pl.BlockSpec((tn, width), lambda i, seed: (i, 0))],
            out_specs=pl.BlockSpec((tn, width), lambda i, seed: (i, 0)),
        ),
        compiler_params=pltpu.CompilerParams(
            dimension_semantics=("parallel",),   # hash RNG -> grid steps independent
            vmem_limit_bytes=vmem_limit,
        ),
    )(seed_arr, xr)

    if nodes_per_row > 1:
        out = out.reshape(N, D)
    return out


def _check_rows(out_np, x_np):
    for r in range(x_np.shape[0]):
        row_zero = bool((out_np[r] == 0.0).all())
        row_same = bool((out_np[r] == x_np[r]).all())
        assert row_zero or row_same, f"row {r} neither zeroed nor preserved"


if __name__ == "__main__":
    key = jax.random.PRNGKey(0)

    # Small graph: 16 nodes, 32 features (lane-dense path: 4 nodes per lane row).
    N, D = 16, 32
    x = jax.random.normal(key, (N, D), dtype=jnp.float32)

    out = jax.block_until_ready(mask_node(x, q=0.7, seed=0))
    _check_rows(jax.device_get(out), jax.device_get(x))

    # Determinism: same seed -> identical mask.
    out2 = jax.block_until_ready(mask_node(x, q=0.7, seed=0))
    assert bool((jax.device_get(out) == jax.device_get(out2)).all())

    # Edge probabilities.
    out_q0 = jax.block_until_ready(mask_node(x, q=0.0, seed=3))
    assert bool((jax.device_get(out_q0) == jax.device_get(x)).all())
    out_q1 = jax.block_until_ready(mask_node(x, q=1.0, seed=3))
    assert bool((jax.device_get(out_q1) == 0.0).all())

    # General path (hoisted per-node hash): feature dim multiple of 128, grid split.
    key2 = jax.random.PRNGKey(0)
    x_big = jax.random.normal(key2, (16, 256), dtype=jnp.float32)
    out_big = jax.block_until_ready(mask_node(x_big, q=0.7, seed=7))
    _check_rows(jax.device_get(out_big), jax.device_get(x_big))

    # Ragged grid (rows not divisible by the row tile) -> exercises masked last block.
    key3 = jax.random.PRNGKey(0)
    x_rag = jax.random.normal(key3, (20, 256), dtype=jnp.float32)
    out_rag = jax.block_until_ready(mask_node(x_rag, q=0.5, seed=11))
    _check_rows(jax.device_get(out_rag), jax.device_get(x_rag))

    print("KERNEL_OK")
</pallas_src>

<mosaic_0001>
module attributes {stable_mosaic.version = 11 : i64} {
  func.func @kernel(%arg0: i32, %arg1: memref<1xi32, #tpu.memory_space<smem>>, %arg2: memref<4x128xf32, #tpu.memory_space<vmem>>, %arg3: memref<4x128xf32, #tpu.memory_space<vmem>>) attributes {dimension_semantics = [#tpu.dimension_semantics<parallel>], iteration_bounds = array<i64: 1>, scalar_prefetch = 1 : i64, scratch_operands = 0 : i64, tpu.core_type = #tpu.core_type<tc>, window_params = [{transform_indices = @transform_0, window_bounds = array<i64: 4, 128>}, {transform_indices = @transform_1, window_bounds = array<i64: 4, 128>}]} {
    %c0 = arith.constant 0 : index
    %0 = memref.load %arg1[%c0] : memref<1xi32, #tpu.memory_space<smem>>
    %c4_i32 = arith.constant 4 : i32
    %1 = arith.muli %arg0, %c4_i32 : i32
    %2 = tpu.iota {dimensions = array<i32: 0>} : vector<4x128xi32>
    %3 = vector.broadcast %1 : i32 to vector<4x128xi32>
    %4 = arith.addi %2, %3 : vector<4x128xi32>
    %5 = tpu.iota {dimensions = array<i32: 1>} : vector<4x128xi32>
    %c4_i32_0 = arith.constant 4 : i32
    %6 = vector.broadcast %c4_i32_0 : i32 to vector<4x128xi32>
    %7 = arith.muli %4, %6 : vector<4x128xi32>
    %c5_i32 = arith.constant 5 : i32
    %8 = vector.broadcast %c5_i32 : i32 to vector<4x128xi32>
    %9 = arith.shrsi %5, %8 : vector<4x128xi32>
    %10 = arith.addi %7, %9 : vector<4x128xi32>
    %c-1640531527_i32 = arith.constant -1640531527 : i32
    %11 = arith.muli %0, %c-1640531527_i32 : i32
    %12 = vector.broadcast %11 : i32 to vector<4x128xi32>
    %13 = arith.xori %10, %12 : vector<4x128xi32>
    %c16_i32 = arith.constant 16 : i32
    %14 = vector.broadcast %c16_i32 : i32 to vector<4x128xi32>
    %15 = arith.shrui %13, %14 : vector<4x128xi32>
    %16 = arith.xori %13, %15 : vector<4x128xi32>
    %c2146121005_i32 = arith.constant 2146121005 : i32
    %17 = vector.broadcast %c2146121005_i32 : i32 to vector<4x128xi32>
    %18 = arith.muli %16, %17 : vector<4x128xi32>
    %c15_i32 = arith.constant 15 : i32
    %19 = vector.broadcast %c15_i32 : i32 to vector<4x128xi32>
    %20 = arith.shrui %18, %19 : vector<4x128xi32>
    %21 = arith.xori %18, %20 : vector<4x128xi32>
    %c-2073254261_i32 = arith.constant -2073254261 : i32
    %22 = vector.broadcast %c-2073254261_i32 : i32 to vector<4x128xi32>
    %23 = arith.muli %21, %22 : vector<4x128xi32>
    %c16_i32_1 = arith.constant 16 : i32
    %24 = vector.broadcast %c16_i32_1 : i32 to vector<4x128xi32>
    %25 = arith.shrui %23, %24 : vector<4x128xi32>
    %26 = arith.xori %23, %25 : vector<4x128xi32>
    %c8_i32 = arith.constant 8 : i32
    %27 = vector.broadcast %c8_i32 : i32 to vector<4x128xi32>
    %28 = arith.shrui %26, %27 : vector<4x128xi32>
    %c11744051_i32 = arith.constant 11744051 : i32
    %29 = vector.broadcast %c11744051_i32 : i32 to vector<4x128xi32>
    %30 = arith.cmpi ult, %28, %29 : vector<4x128xi32>
    %c0_2 = arith.constant 0 : index
    %c0_3 = arith.constant 0 : index
    %31 = vector.load %arg2[%c0_2, %c0_3] : memref<4x128xf32, #tpu.memory_space<vmem>>, vector<4x128xf32>
    %c0_i32 = arith.constant 0 : i32
    %32 = arith.sitofp %c0_i32 : i32 to f32
    %33 = vector.broadcast %32 : f32 to vector<4x128xf32>
    %34 = arith.select %30, %33, %31 : vector<4x128xi1>, vector<4x128xf32>
    %c0_4 = arith.constant 0 : index
    %c0_5 = arith.constant 0 : index
    %35 = vector.load %arg3[%c0_4, %c0_5] : memref<4x128xf32, #tpu.memory_space<vmem>>, vector<4x128xf32>
    tpu.vector_store %arg3[%c0_4, %c0_5], %34 {strides = array<i32>} : memref<4x128xf32, #tpu.memory_space<vmem>>, vector<4x128xf32>,
    return
  }
  func.func @transform_0(%arg0: i32, %arg1: memref<1xi32, #tpu.memory_space<smem>>) -> (i32, i32) {
    %c0_i32 = arith.constant 0 : i32
    %c0_i32_0 = arith.constant 0 : i32
    return %arg0, %c0_i32 : i32, i32
  }
  func.func @transform_1(%arg0: i32, %arg1: memref<1xi32, #tpu.memory_space<smem>>) -> (i32, i32) {
    %c0_i32 = arith.constant 0 : i32
    %c0_i32_0 = arith.constant 0 : i32
    return %arg0, %c0_i32 : i32, i32
  }
}

</mosaic_0001>

<bundles_post_ra>
// kernel: tpu_custom_call.1
= control target key start
LH: loop header
LB: loop body
LE: loop exit
PB: predicated region body
PF: predicated region fallthrough
CT: control target
= control target key end

     0   :  { %8 = vsyncpa [#allocation5], 0  ;;  %s159_s0 = inlined_call_operand.<no memory space> [shape: s32[1], index: 0, kind: input, shape index: {}]   ;;  %s160_s1 = inlined_call_operand.hbm [shape: f32[4,128], index: 1, kind: input, shape index: {}]   ;;  %s161_s2 = inlined_call_operand.hbm [shape: f32[4,128], index: 2, kind: output, shape index: {}]  }
   0x1   :  { %9 = vsyncpa [#allocation6], 0  ;;  %s115_s9 = smov [#allocation4]   ;;  %s67_s13 = scalar_lea.hbm %s160_s1, 64 }
   0x2   :  { %s16_s10 = sshll.u32 %s115_s9, 4  ;;  %p68_p0 = scmp.ne.s32.totalorder %s160_s1, %s67_s13  ;;  %s17_s10 = int_to_ptr.vmem [resolvable:$true] %s16_s10 }
   0x3   :  { %p71_p1 = scmp.lt.u32.totalorder %s67_s13, %s160_s1 }
   0x5   :  { %p73_p2 = pnand %p71_p1, %p68_p0 }
   0x7   :  { %76 = shalt.err (!%p73_p2)
}
   0x8   :  { %s77_s18 = scalar_lea.vmem %s17_s10, 64  ;;  %p82_p4 = scmp.lt.s32.totalorder %s17_s10, %s17_s10 }
   0x9   :  { %p78_p3 = scmp.ne.s32.totalorder %s17_s10, %s77_s18  ;;  %p83_p5 = scmp.lt.s32.totalorder %s77_s18, %s77_s18 }
   0xb   :  { %p84_p6 = por %p83_p5, %p82_p4 }
   0xd   :  { %p85_p7 = pnand %p84_p6, %p78_p3 }
   0xf   :  { %88 = shalt.err (!%p85_p7)
}
  0x10   :  { %19 = dma.hbm_to_vmem [thread:$0]  %s160_s1, 64, %s17_s10, [#allocation5]  }
  0x11   :  { %111 = dma.done.wait [#allocation5], 64  }
  0x12   :  { %112 = vsyncadd [#allocation5], 4294967232  ;;  %v25_v0 = vlaneseq  ;;  %s34_s23 = smul.u32 2654435769, %s159_s0  ;;  %s116_s1 = smov [#allocation7]  }
  0x13   :  { %s56_s24 = sshll.u32 %s116_s1, 4  ;;  %v47_v17 = vld [vmem:[#allocation4] sm:$0xf]  ;;  %s57_s24 = int_to_ptr.vmem [resolvable:$true] %s56_s24 }
  0x14   :  { %v26_v1 = vshrl.u32 %v25_v0, 7  ;;  %v30_v2 = vand.u32 127, %v25_v0  ;;  %v35_v5 = vstv %s34_s23  ;;  %s89_s0 = scalar_lea.vmem %s57_s24, 64  ;;  %p94_p9 = scmp.lt.s32.totalorder %s57_s24, %s57_s24 }
  0x15   :  { %p90_p8 = scmp.ne.s32.totalorder %s57_s24, %s89_s0  ;;  %p95_p10 = scmp.lt.s32.totalorder %s89_s0, %s89_s0 }
  0x16   :  { %v31_v3 = vmul.u32 4, %v26_v1  ;;  %v32_v4 = vshra.s32 %v30_v2, 5 }
  0x17   :  { %p96_p11 = por %p95_p10, %p94_p9 }
  0x18   :  { %v33_v6 = vadd.s32 %v32_v4, %v31_v3 }
  0x19   :  { %p97_p12 = pnand %p96_p11, %p90_p8 }
  0x1a   :  { %v36_v7 = vxor.u32 %v35_v5, %v33_v6 }
  0x1c   :  { %v37_v8 = vshrl.u32 %v36_v7, 16 }
  0x1e   :  { %v38_v9 = vxor.u32 %v37_v8, %v36_v7 }
  0x20   :  { %v39_v10 = vmul.u32 2146121005, %v38_v9 }
  0x22   :  { %v40_v11 = vshrl.u32 %v39_v10, 15 }
  0x24   :  { %v41_v12 = vxor.u32 %v40_v11, %v39_v10 }
  0x26   :  { %v42_v13 = vmul.u32 2221713035, %v41_v12 }
  0x28   :  { %v43_v14 = vshrl.u32 %v42_v13, 16 }
  0x2a   :  { %v44_v15 = vxor.u32 %v43_v14, %v42_v13 }
  0x2c   :  { %v45_v16 = vshrl.u32 %v44_v15, 8 }
  0x2e   :  { %vm46_vm0 = vcmp.lt.u32.totalorder %v45_v16, 11744051 }
  0x2f   :  { %v48_v18 = vsel %vm46_vm0, 0.0, %v47_v17 }
  0x30   :  { %49 = vst [vmem:[#allocation7] sm:$0xf] %v48_v18 }
  0x31   :  { %100 = shalt.err (!%p97_p12)
}
  0x32   :  { %s101_s27 = scalar_lea.hbm %s161_s2, 64 }
  0x33   :  { %p102_p13 = scmp.ne.s32.totalorder %s161_s2, %s101_s27  ;;  %p105_p0 = scmp.lt.u32.totalorder %s101_s27, %s161_s2 }
  0x35   :  { %p107_p1 = pnand %p105_p0, %p102_p13 }
  0x37   :  { %110 = shalt.err (!%p107_p1)
}
  0x38   :  { %59 = dma.vmem_to_hbm [thread:$0]  %s57_s24, 64, %s161_s2, [#allocation6]  }
  0x39   :  { %113 = dma.done.wait [#allocation6], 64  }
  0x3a   :  { %114 = vsyncadd [#allocation6], 4294967232 }
  0x3b   :  { %63 = vsyncpa [#allocation5], 1 }
  0x3c   :  { %64 = vsyncpa [#allocation6], 1 }

</bundles_post_ra>
